<compile_context>
chip_gen: v5e
topology: v5e:2x2
jax: 0.10.0
libtpu: 0.0.40
codegen_flags: <defaults>
</compile_context>

<pallas_src>
import functools

import jax
import jax.numpy as jnp
from jax import lax
from jax.experimental import pallas as pl
from jax.experimental.pallas import tpu as pltpu


def _round_up(x, m):
    return (x + m - 1) // m * m


def _contrastive_loss_kernel(im_i_ref, s_i_ref, s_j_ref, im_j_ref,
                             out_s_ref, out_im_ref, diag_ref,
                             *, margin, max_violation, n_valid, pad_cols):
    i = pl.program_id(0)
    j = pl.program_id(1)

    im_i = im_i_ref[...]          # (TM, Dp)  rows I of im
    s_i = s_i_ref[...]            # (TM, Dp)  rows I of s
    s_j = s_j_ref[...]            # (TN, Dp)  rows J of s
    im_j = im_j_ref[...]          # (TN, Dp)  rows J of im

    # j == 0: reset row-resident accumulators and compute the loop-invariant
    # diagonal <im_I, s_I> once per row tile (it depends only on i).
    @pl.when(j == 0)
    def _init():
        out_s_ref[...] = jnp.zeros_like(out_s_ref)
        out_im_ref[...] = jnp.zeros_like(out_im_ref)
        diag_ref[...] = jnp.sum(
            im_i.astype(jnp.float32) * s_i.astype(jnp.float32),
            axis=1, keepdims=True)

    dn = (((1,), (1,)), ((), ()))  # contract last dims (NT matmul, no transpose)
    # scores[p, q]   = <im_{I_p}, s_{J_q}>
    scores = lax.dot_general(im_i, s_j, dn, preferred_element_type=jnp.float32)
    # scores_t[p, q] = <s_{I_p}, im_{J_q}> = scores_global[J_q, I_p]; a second
    # MXU matmul instead of an XLU transpose keeps cost_im row-reduced.
    scores_t = lax.dot_general(s_i, im_j, dn, preferred_element_type=jnp.float32)

    tm, tn = scores.shape
    diag = diag_ref[...]                       # (TM, 1)
    thr = diag - margin                        # per-row threshold

    # mask1[p,q] = scores[p,q] == diag[p]; mask2 = mask1.T, which for the
    # transposed cost_im tile is the very same mask.  The identity mask makes
    # the diagonal robust to ulp differences between the MXU scores and the
    # VPU diag.  Padded rows are masked for free (zero row -> scores == diag).
    col_iota = lax.broadcasted_iota(jnp.int32, (tm, tn), 1)
    row_iota = lax.broadcasted_iota(jnp.int32, (tm, tn), 0)
    ident = row_iota == col_iota + (j * tn - i * tm)
    zero_mask = (scores == diag) | ident
    if pad_cols:                               # static: only if B was padded
        zero_mask = zero_mask | ((col_iota + j * tn) >= n_valid)

    cost_s = jnp.where(zero_mask, 0.0, jnp.maximum(scores - thr, 0.0))
    cost_im_t = jnp.where(zero_mask, 0.0, jnp.maximum(scores_t - thr, 0.0))

    # Lane-dense accumulation: fold TN columns into LW-wide lane groups with
    # cheap VPU adds/maxes; the final cross-lane reduce happens once, outside
    # the kernel.
    lw = out_s_ref.shape[1]
    ngroups = tn // lw
    op = jnp.maximum if max_violation else jnp.add

    def fold(x):
        acc = x[:, 0:lw]
        for g in range(1, ngroups):
            acc = op(acc, x[:, g * lw:(g + 1) * lw])
        return acc

    if max_violation:
        out_s_ref[...] = jnp.maximum(out_s_ref[...], fold(cost_s))
        out_im_ref[...] = jnp.maximum(out_im_ref[...], fold(cost_im_t))
    else:
        out_s_ref[...] = out_s_ref[...] + fold(cost_s)
        out_im_ref[...] = out_im_ref[...] + fold(cost_im_t)


def contrastive_loss(im, s, *, margin=1.0, max_violation=False,
                     max_row_tile=2048):
    """Pallas-TPU equivalent of ContrastiveLoss(measure='dot').forward(im, s)."""
    assert im.ndim == 2 and s.ndim == 2 and im.shape == s.shape
    B, D = im.shape
    itemsize = jnp.dtype(im.dtype).itemsize
    sub = {4: 8, 2: 16, 1: 32}.get(itemsize, 8)     # sublane multiple per dtype
    dp = _round_up(D, 128)                          # lane-axis padding

    # VMEM sizing: 128 MiB physical on v5e/v6e, only 64 MiB per TC on v7x.
    try:
        vmem_cap = int(getattr(pltpu.get_tpu_info(), "vmem_capacity_bytes",
                               64 * 1024 * 1024))
    except Exception:
        vmem_cap = 64 * 1024 * 1024                 # conservative v7x default
    vmem_limit = max(32 * 1024 * 1024,
                     min(vmem_cap - 8 * 1024 * 1024, 112 * 1024 * 1024))
    budget = int(0.7 * vmem_limit)                  # for pipelined tiles

    bsub = _round_up(B, sub)
    if bsub <= 256:
        tn = tm = bp = bsub                         # single tile in both dims
    else:
        tn = 256                                    # MXU-width column tile
        bp0 = _round_up(B, tn)
        ncol = bp0 // tn
        # Row tile TM (multiple of TN): as large as VMEM allows -- column
        # blocks are re-fetched once per row tile, so big TM cuts HBM traffic.
        col_bytes = 2 * 2 * tn * dp * itemsize          # s_j, im_j dbl-buffered
        per_row = (2 * 2 * dp * itemsize                 # im_i, s_i dbl-buffered
                   + 2 * 2 * 128 * 4                     # two (TM,128) outputs
                   + 8 * dp                              # diag temporaries
                   + 8 * tn * 4                          # f32 tile intermediates
                   + 4)                                  # diag scratch
        units = max(1, min((budget - col_bytes) // (per_row * tn),
                           max_row_tile // tn, ncol))
        best = 1                                    # bound batch-padding waste
        for u in range(1, units + 1):
            if _round_up(B, u * tn) - bp0 <= bp0 // 8:
                best = u
        units = best
        # v7x megacore: keep >= 2 row tiles so the "parallel" axis splits
        # across both TensorCores.
        if units >= ncol and ncol >= 2:
            units = (ncol + 1) // 2
        tm = units * tn
        bp = _round_up(B, tm)

    if (bp, dp) != (B, D):
        im = jnp.pad(im, ((0, bp - B), (0, dp - D)))
        s = jnp.pad(s, ((0, bp - B), (0, dp - D)))

    lw = 128 if tn % 128 == 0 else tn               # lane-dense accumulator width
    grid = (bp // tm, bp // tn)

    kernel = functools.partial(
        _contrastive_loss_kernel, margin=float(margin),
        max_violation=bool(max_violation), n_valid=B, pad_cols=bool(bp > B))

    row_spec = pl.BlockSpec((tm, dp), lambda i, j: (i, 0))
    col_spec = pl.BlockSpec((tn, dp), lambda i, j: (j, 0))
    out_spec = pl.BlockSpec((tm, lw), lambda i, j: (i, 0))

    n_row_tiles = bp // tm
    cost = pl.CostEstimate(
        flops=4 * bp * bp * dp,                              # two NT matmuls
        transcendentals=0,
        bytes_accessed=(2 * bp * dp * itemsize               # row blocks (once)
                        + 2 * bp * dp * itemsize * n_row_tiles  # col re-fetch
                        + 2 * bp * lw * 4))

    out_s, out_im = pl.pallas_call(
        kernel,
        out_shape=(jax.ShapeDtypeStruct((bp, lw), jnp.float32),
                   jax.ShapeDtypeStruct((bp, lw), jnp.float32)),
        grid=grid,
        in_specs=[row_spec, row_spec, col_spec, col_spec],
        out_specs=(out_spec, out_spec),
        scratch_shapes=[pltpu.VMEM((tm, 1), jnp.float32)],
        compiler_params=pltpu.CompilerParams(
            dimension_semantics=("parallel", "arbitrary"),
            vmem_limit_bytes=int(vmem_limit)),
        cost_estimate=cost,
    )(im, s, s, im)

    # Final cross-lane reduction (once, outside the kernel).  Padded rows
    # contribute exactly 0 in both modes.
    if max_violation:
        return jnp.sum(jnp.max(out_s, axis=1)) + jnp.sum(jnp.max(out_im, axis=1))
    return jnp.sum(out_s) + jnp.sum(out_im)


def _reference_loss(im, s, margin=1.0, max_violation=False):
    """Pure-JAX reference mirroring the PyTorch forward exactly."""
    scores = im @ s.T
    diag = jnp.diagonal(scores)[:, None]
    d1 = jnp.broadcast_to(diag, scores.shape)
    d2 = jnp.broadcast_to(diag.T, scores.shape)
    cost_s = jnp.maximum(margin + scores - d1, 0.0)
    cost_im = jnp.maximum(margin + scores - d2, 0.0)
    mask1 = scores == d1
    mask2 = mask1.T
    cost_s = jnp.where(mask1, 0.0, cost_s)
    cost_im = jnp.where(mask2, 0.0, cost_im)
    if max_violation:
        return jnp.sum(jnp.max(cost_s, axis=1)) + jnp.sum(jnp.max(cost_im, axis=0))
    return jnp.sum(cost_s) + jnp.sum(cost_im)


if __name__ == "__main__":
    key = jax.random.PRNGKey(0)
    configs = [
        # (B, D, max_violation)
        (8, 32, False),     # tiny: exercises sublane/lane padding, single tile
        (8, 32, True),
        (200, 96, False),   # single tile, no batch pad, lane pad on D
        (300, 64, False),   # multi-tile 2x2 grid with batch padding
        (300, 64, True),
    ]
    for idx, (B, D, mv) in enumerate(configs):
        k_im, k_s = jax.random.split(jax.random.fold_in(key, idx))
        im = jax.random.normal(k_im, (B, D), dtype=jnp.float32)
        s = jax.random.normal(k_s, (B, D), dtype=jnp.float32)

        loss = contrastive_loss(im, s, margin=1.0, max_violation=mv)
        jax.block_until_ready(loss)

        ref = _reference_loss(im, s, margin=1.0, max_violation=mv)
        assert jnp.allclose(loss, ref, rtol=2e-4, atol=1e-2), (B, D, mv, loss, ref)

    print("KERNEL_OK")
</pallas_src>

<mosaic_0001>
module attributes {stable_mosaic.version = 11 : i64} {
  func.func @_contrastive_loss_kernel(%arg0: i32, %arg1: i32, %arg2: memref<8x128xf32, #tpu.memory_space<vmem>>, %arg3: memref<8x128xf32, #tpu.memory_space<vmem>>, %arg4: memref<8x128xf32, #tpu.memory_space<vmem>>, %arg5: memref<8x128xf32, #tpu.memory_space<vmem>>, %arg6: memref<8x8xf32, #tpu.memory_space<vmem>>, %arg7: memref<8x8xf32, #tpu.memory_space<vmem>>, %arg8: memref<8x1xf32, #tpu.memory_space<vmem>>) attributes {dimension_semantics = [#tpu.dimension_semantics<parallel>, #tpu.dimension_semantics<arbitrary>], iteration_bounds = array<i64: 1, 1>, scalar_prefetch = 0 : i64, scratch_operands = 1 : i64, tpu.core_type = #tpu.core_type<tc>, window_params = [{transform_indices = @transform_0, window_bounds = array<i64: 8, 128>}, {transform_indices = @transform_1, window_bounds = array<i64: 8, 128>}, {transform_indices = @transform_2, window_bounds = array<i64: 8, 128>}, {transform_indices = @transform_3, window_bounds = array<i64: 8, 128>}, {transform_indices = @transform_4, window_bounds = array<i64: 8, 8>}, {transform_indices = @transform_5, window_bounds = array<i64: 8, 8>}]} {
    %c0 = arith.constant 0 : index
    %c0_0 = arith.constant 0 : index
    %0 = vector.load %arg2[%c0, %c0_0] : memref<8x128xf32, #tpu.memory_space<vmem>>, vector<8x128xf32>
    %c0_1 = arith.constant 0 : index
    %c0_2 = arith.constant 0 : index
    %1 = vector.load %arg3[%c0_1, %c0_2] : memref<8x128xf32, #tpu.memory_space<vmem>>, vector<8x128xf32>
    %c0_3 = arith.constant 0 : index
    %c0_4 = arith.constant 0 : index
    %2 = vector.load %arg4[%c0_3, %c0_4] : memref<8x128xf32, #tpu.memory_space<vmem>>, vector<8x128xf32>
    %c0_5 = arith.constant 0 : index
    %c0_6 = arith.constant 0 : index
    %3 = vector.load %arg5[%c0_5, %c0_6] : memref<8x128xf32, #tpu.memory_space<vmem>>, vector<8x128xf32>
    %c0_i32 = arith.constant 0 : i32
    %4 = arith.cmpi eq, %arg1, %c0_i32 : i32
    %5 = arith.extui %4 : i1 to i32
    %c0_i32_7 = arith.constant 0 : i32
    %6 = arith.cmpi ne, %5, %c0_i32_7 : i32
    scf.if %6 {
      %cst_25 = arith.constant 0.000000e+00 : f32
      %41 = vector.broadcast %cst_25 : f32 to vector<8x8xf32>
      %c0_26 = arith.constant 0 : index
      %c0_27 = arith.constant 0 : index
      %42 = vector.load %arg6[%c0_26, %c0_27] : memref<8x8xf32, #tpu.memory_space<vmem>>, vector<8x8xf32>
      tpu.vector_store %arg6[%c0_26, %c0_27], %41 {strides = array<i32>} : memref<8x8xf32, #tpu.memory_space<vmem>>, vector<8x8xf32>,
      %cst_28 = arith.constant 0.000000e+00 : f32
      %43 = vector.broadcast %cst_28 : f32 to vector<8x8xf32>
      %c0_29 = arith.constant 0 : index
      %c0_30 = arith.constant 0 : index
      %44 = vector.load %arg7[%c0_29, %c0_30] : memref<8x8xf32, #tpu.memory_space<vmem>>, vector<8x8xf32>
      tpu.vector_store %arg7[%c0_29, %c0_30], %43 {strides = array<i32>} : memref<8x8xf32, #tpu.memory_space<vmem>>, vector<8x8xf32>,
      %45 = arith.mulf %0, %1 : vector<8x128xf32>
      %cst_31 = arith.constant dense<0.000000e+00> : vector<8xf32>
      %46 = vector.multi_reduction <add>, %45, %cst_31 [1] : vector<8x128xf32> to vector<8xf32>
      %47 = vector.shape_cast %46 : vector<8xf32> to vector<8x1xf32>
      %c0_32 = arith.constant 0 : index
      %c0_33 = arith.constant 0 : index
      %48 = vector.load %arg8[%c0_32, %c0_33] : memref<8x1xf32, #tpu.memory_space<vmem>>, vector<8x1xf32>
      tpu.vector_store %arg8[%c0_32, %c0_33], %47 {strides = array<i32>} : memref<8x1xf32, #tpu.memory_space<vmem>>, vector<8x1xf32>,
    } else {
    }
    %cst = arith.constant dense<0.000000e+00> : vector<8x8xf32>
    %7 = tpu.matmul %0, %2, %cst {dimension_numbers = #tpu.dot_dimension_numbers<[1], [1], [0], [0], [0, 0, 1, 0], [], []>} : vector<8x128xf32>, vector<8x128xf32>, vector<8x8xf32> -> vector<8x8xf32>
    %cst_8 = arith.constant dense<0.000000e+00> : vector<8x8xf32>
    %8 = tpu.matmul %1, %3, %cst_8 {dimension_numbers = #tpu.dot_dimension_numbers<[1], [1], [0], [0], [0, 0, 1, 0], [], []>} : vector<8x128xf32>, vector<8x128xf32>, vector<8x8xf32> -> vector<8x8xf32>
    %c0_9 = arith.constant 0 : index
    %c0_10 = arith.constant 0 : index
    %9 = vector.load %arg8[%c0_9, %c0_10] : memref<8x1xf32, #tpu.memory_space<vmem>>, vector<8x1xf32>
    %cst_11 = arith.constant 1.000000e+00 : f32
    %10 = vector.broadcast %cst_11 : f32 to vector<8x1xf32>
    %11 = arith.subf %9, %10 : vector<8x1xf32>
    %12 = tpu.iota {dimensions = array<i32: 1>} : vector<8x8xi32>
    %13 = tpu.iota {dimensions = array<i32: 0>} : vector<8x8xi32>
    %c8_i32 = arith.constant 8 : i32
    %14 = arith.muli %arg1, %c8_i32 : i32
    %c8_i32_12 = arith.constant 8 : i32
    %15 = arith.muli %arg0, %c8_i32_12 : i32
    %16 = arith.subi %14, %15 : i32
    %17 = vector.broadcast %16 : i32 to vector<8x8xi32>
    %18 = arith.addi %12, %17 : vector<8x8xi32>
    %19 = arith.cmpi eq, %13, %18 : vector<8x8xi32>
    %20 = vector.broadcast %9 : vector<8x1xf32> to vector<8x8xf32>
    %21 = arith.cmpf oeq, %7, %20 : vector<8x8xf32>
    %22 = arith.ori %21, %19 : vector<8x8xi1>
    %23 = vector.broadcast %11 : vector<8x1xf32> to vector<8x8xf32>
    %24 = arith.subf %7, %23 : vector<8x8xf32>
    %cst_13 = arith.constant 0.000000e+00 : f32
    %25 = vector.broadcast %cst_13 : f32 to vector<8x8xf32>
    %26 = arith.maximumf %24, %25 : vector<8x8xf32>
    %cst_14 = arith.constant 0.000000e+00 : f32
    %27 = vector.broadcast %cst_14 : f32 to vector<8x8xf32>
    %28 = arith.select %22, %27, %26 : vector<8x8xi1>, vector<8x8xf32>
    %29 = vector.broadcast %11 : vector<8x1xf32> to vector<8x8xf32>
    %30 = arith.subf %8, %29 : vector<8x8xf32>
    %cst_15 = arith.constant 0.000000e+00 : f32
    %31 = vector.broadcast %cst_15 : f32 to vector<8x8xf32>
    %32 = arith.maximumf %30, %31 : vector<8x8xf32>
    %cst_16 = arith.constant 0.000000e+00 : f32
    %33 = vector.broadcast %cst_16 : f32 to vector<8x8xf32>
    %34 = arith.select %22, %33, %32 : vector<8x8xi1>, vector<8x8xf32>
    %c0_17 = arith.constant 0 : index
    %c0_18 = arith.constant 0 : index
    %35 = vector.load %arg6[%c0_17, %c0_18] : memref<8x8xf32, #tpu.memory_space<vmem>>, vector<8x8xf32>
    %36 = arith.addf %35, %28 : vector<8x8xf32>
    %c0_19 = arith.constant 0 : index
    %c0_20 = arith.constant 0 : index
    %37 = vector.load %arg6[%c0_19, %c0_20] : memref<8x8xf32, #tpu.memory_space<vmem>>, vector<8x8xf32>
    tpu.vector_store %arg6[%c0_19, %c0_20], %36 {strides = array<i32>} : memref<8x8xf32, #tpu.memory_space<vmem>>, vector<8x8xf32>,
    %c0_21 = arith.constant 0 : index
    %c0_22 = arith.constant 0 : index
    %38 = vector.load %arg7[%c0_21, %c0_22] : memref<8x8xf32, #tpu.memory_space<vmem>>, vector<8x8xf32>
    %39 = arith.addf %38, %34 : vector<8x8xf32>
    %c0_23 = arith.constant 0 : index
    %c0_24 = arith.constant 0 : index
    %40 = vector.load %arg7[%c0_23, %c0_24] : memref<8x8xf32, #tpu.memory_space<vmem>>, vector<8x8xf32>
    tpu.vector_store %arg7[%c0_23, %c0_24], %39 {strides = array<i32>} : memref<8x8xf32, #tpu.memory_space<vmem>>, vector<8x8xf32>,
    return
  }
  func.func @transform_0(%arg0: i32, %arg1: i32) -> (i32, i32) {
    %c0_i32 = arith.constant 0 : i32
    %c0_i32_0 = arith.constant 0 : i32
    return %arg0, %c0_i32 : i32, i32
  }
  func.func @transform_1(%arg0: i32, %arg1: i32) -> (i32, i32) {
    %c0_i32 = arith.constant 0 : i32
    %c0_i32_0 = arith.constant 0 : i32
    return %arg0, %c0_i32 : i32, i32
  }
  func.func @transform_2(%arg0: i32, %arg1: i32) -> (i32, i32) {
    %c0_i32 = arith.constant 0 : i32
    %c0_i32_0 = arith.constant 0 : i32
    return %arg1, %c0_i32 : i32, i32
  }
  func.func @transform_3(%arg0: i32, %arg1: i32) -> (i32, i32) {
    %c0_i32 = arith.constant 0 : i32
    %c0_i32_0 = arith.constant 0 : i32
    return %arg1, %c0_i32 : i32, i32
  }
  func.func @transform_4(%arg0: i32, %arg1: i32) -> (i32, i32) {
    %c0_i32 = arith.constant 0 : i32
    %c0_i32_0 = arith.constant 0 : i32
    return %arg0, %c0_i32 : i32, i32
  }
  func.func @transform_5(%arg0: i32, %arg1: i32) -> (i32, i32) {
    %c0_i32 = arith.constant 0 : i32
    %c0_i32_0 = arith.constant 0 : i32
    return %arg0, %c0_i32 : i32, i32
  }
}

</mosaic_0001>

<bundles_post_ra>
// kernel: tpu_custom_call.1
= control target key start
LH: loop header
LB: loop body
LE: loop exit
PB: predicated region body
PF: predicated region fallthrough
CT: control target
= control target key end

     0   :  { %11 = vsyncpa [#allocation4], 0  ;;  %s429_s0 = inlined_call_operand.hbm [shape: f32[8,128], index: 0, kind: input, shape index: {}]   ;;  %s430_s1 = inlined_call_operand.hbm [shape: f32[8,128], index: 1, kind: input, shape index: {}]   ;;  %s431_s2 = inlined_call_operand.hbm [shape: f32[8,128], index: 2, kind: input, shape index: {}]   ;;  %s432_s3 = inlined_call_operand.hbm [shape: f32[8,128], index: 3, kind: input, shape index: {}]   ;;  %s433_s4 = inlined_call_operand.hbm [shape: f32[8,8], index: 4, kind: output, shape index: {0}]   ;;  %s434_s5 = inlined_call_operand.hbm [shape: f32[8,8], index: 5, kind: output, shape index: {1}]  }
   0x1   :  { %12 = vsyncpa [#allocation7], 0 }
   0x2   :  { %13 = vsyncpa [#allocation10], 0 }
   0x3   :  { %14 = vsyncpa [#allocation5], 0  ;;  %s32_s20 = sshll.u32 %s430_s1, 4  ;;  %s33_s20 = int_to_ptr.hbm [resolvable:$true] %s32_s20 }
   0x4   :  { %15 = vsyncpa [#allocation13], 0  ;;  %s369_s21 = smov [#allocation6]   ;;  %s21_s25 = sshll.u32 %s429_s0, 4  ;;  %s22_s25 = int_to_ptr.hbm [resolvable:$true] %s21_s25 }
   0x5   :  { %s34_s22 = sshll.u32 %s369_s21, 4  ;;  %s370_s26 = smov [#allocation3]   ;;  %s35_s22 = int_to_ptr.vmem [resolvable:$true] %s34_s22 }
   0x6   :  { %37 = dma.hbm_to_vmem [thread:$0]  %s33_s20, 128, %s35_s22, [#allocation7]  }
   0x7   :  { %s23_s27 = sshll.u32 %s370_s26, 4  ;;  %s43_s30 = sshll.u32 %s431_s2, 4  ;;  %s24_s27 = int_to_ptr.vmem [resolvable:$true] %s23_s27  ;;  %s44_s30 = int_to_ptr.hbm [resolvable:$true] %s43_s30 }
   0x8   :  { %26 = dma.hbm_to_vmem [thread:$0]  %s22_s25, 128, %s24_s27, [#allocation4]  }
   0x9   :  { %s54_s7 = sshll.u32 %s432_s3, 4  ;;  %s371_s8 = smov [#allocation8]   ;;  %s55_s7 = int_to_ptr.hbm [resolvable:$true] %s54_s7 }
   0xa   :  { %s45_s9 = sshll.u32 %s371_s8, 4  ;;  %s372_s0 = smov [#allocation9]   ;;  %s46_s9 = int_to_ptr.vmem [resolvable:$true] %s45_s9 }
   0xb   :  { %48 = dma.hbm_to_vmem [thread:$0]  %s44_s30, 128, %s46_s9, [#allocation7]  }
   0xc   :  { %s56_s10 = sshll.u32 %s372_s0, 4  ;;  %s57_s10 = int_to_ptr.vmem [resolvable:$true] %s56_s10 }
   0xd   :  { %59 = dma.hbm_to_vmem [thread:$0]  %s55_s7, 128, %s57_s10, [#allocation10]  }
   0xe   :  { %359 = dma.done.wait [#allocation4], 128  }
   0xf   :  { %360 = vsyncadd [#allocation4], 4294967168 }
  0x10   :  { %361 = dma.done.wait [#allocation7], 256  }
  0x11   :  { %362 = vsyncadd [#allocation7], 4294967040 }
  0x12   :  { %363 = dma.done.wait [#allocation10], 128  }
  0x13   :  { %364 = vsyncadd [#allocation10], 4294967168  ;;  %v76_v0 = vld [vmem:[#allocation3] sm:$0xff]  ;;  %v77_v1 = vld [vmem:[#allocation6] sm:$0xff]  ;;  %v373_v5 = vmov 0   ;;  %vm90_vm0 = vcmask 7168   ;;  %v134_v10 = vlaneseq }
  0x14   :  { %v78_v2 = vld [vmem:[#allocation8] sm:$0xff]  ;;  %v87_v3 = vmul.f32 %v77_v1, %v76_v0  ;;  %v79_v4 = vld [vmem:[#allocation9] sm:$0xff]  ;;  %214 = vset.pattern.permute.xlu1 %v373_v5  ;;  %213 = vset.pattern.permute.xlu0 %v373_v5  ;;  %vm84_vm1 = vcmask 64512   ;;  %v374_v9 = vmov 0.0   ;;  %s375_s2 = smov [#allocation11]   ;;  %s176_s13 = sshll.u32 %s433_s4, 4  ;;  %s177_s13 = int_to_ptr.hbm [resolvable:$true] %s176_s13 }
  0x15   :  { %107 = vmatpush.xpose.msra.mxu0 %v78_v2  ;;  %127 = vmatpush.xpose.msra.mxu1 %v79_v4  ;;  %85 = vst.msk [vmem:[#allocation11] sm:$0xff] %vm84_vm1, %v374_v9  ;;  %v135_v12 = vand.u32 127, %v134_v10  ;;  %v137_v13 = vshrl.u32 %v134_v10, 7  ;;  %s174_s3 = sshll.u32 %s375_s2, 4  ;;  %s376_s14 = smov [#allocation12]   ;;  %s175_s3 = int_to_ptr.vmem [resolvable:$true] %s174_s3 }
  0x16   :  { %88 = vadd.xlane.f32.xlu0 %v87_v3  ;;  %86 = vst.msk [vmem:[#allocation12] sm:$0xff] %vm84_vm1, %v374_v9  ;;  %s185_s15 = sshll.u32 %s376_s14, 4  ;;  %s187_s18 = sshll.u32 %s434_s5, 4  ;;  %s186_s15 = int_to_ptr.vmem [resolvable:$true] %s185_s15  ;;  %s188_s18 = int_to_ptr.hbm [resolvable:$true] %s187_s18 }
  0x17   :  { %vm143_vm2 = vcmp.eq.s32.totalorder %v137_v13, %v135_v12 }
  0x18   :  { %108 = vmatmul.f32.vlgmr.msra.gmra.mxu0 %v76_v0  ;;  %128 = vmatmul.f32.vlgmr.msra.gmra.mxu1 %v77_v1 }
  0x1c   :  { %v162_v19 = vld [vmem:[#allocation11] sm:$0xff] }
  0x1d   :  { %v166_v20 = vld [vmem:[#allocation12] sm:$0xff] }
  0x89   :  { %v89_v6 = vpop.xlane.xlu0 %88 }
  0x8a   :  { %91 = vst.msk [vmem:[#allocation2] sm:$0xff] %vm90_vm0, %v89_v6 }
  0x91   :  { %v132_v7 = vld [vmem:[#allocation2] sm:$0xff] }
  0x92   :  { %146 = vperm.xlu1 %214, %v132_v7   ;;  %v204_v8 = vadd.f32 -1.0, %v132_v7 }
  0x94   :  { %153 = vperm.xlu0 %213, %v204_v8  }
  0x95   :  { %v109_v11 = vpop.f32.mrf.mxu0  ;;  %v129_v15 = vpop.f32.mrf.mxu1 }
 0x104   :  { %v147_v14 = vpop.permute.xlu1 %146 }
 0x105   :  { %vm149_vm3 = vcmp.eq.f32.partialorder %v109_v11, %v147_v14 }
 0x106   :  { %v154_v16 = vpop.permute.xlu0 %153  ;;  %vm150_vm4 = vmor %vm149_vm3, %vm143_vm2 }
 0x107   :  { %v156_v17 = vsub.f32 %v109_v11, %v154_v16  ;;  %v159_v18 = vsub.f32 %v129_v15, %v154_v16 }
 0x109   :  { %v157_v21 = vmax.f32 %v156_v17, 0.0  ;;  %v160_v22 = vmax.f32 %v159_v18, 0.0 }
 0x10b   :  { %v158_v23 = vsel %vm150_vm4, 0.0, %v157_v21  ;;  %v161_v24 = vsel %vm150_vm4, 0.0, %v160_v22 }
 0x10c   :  { %v163_v25 = vadd.f32 %v162_v19, %v158_v23  ;;  %v167_v26 = vadd.f32 %v166_v20, %v161_v24 }
 0x10e   :  { %165 = vst.msk [vmem:[#allocation11] sm:$0xff] %vm84_vm1, %v163_v25 }
 0x10f   :  { %168 = vst.msk [vmem:[#allocation12] sm:$0xff] %vm84_vm1, %v167_v26  ;;  %179 = dma.vmem_to_hbm [thread:$0]  %s175_s3, 128, %s177_s13, [#allocation5]  }
 0x110   :  { %190 = dma.vmem_to_hbm [thread:$0]  %s186_s15, 128, %s188_s18, [#allocation13]  }
 0x111   :  { %365 = dma.done.wait [#allocation5], 128  }
 0x112   :  { %366 = vsyncadd [#allocation5], 4294967168 }
 0x113   :  { %367 = dma.done.wait [#allocation13], 128  }
 0x114   :  { %368 = vsyncadd [#allocation13], 4294967168 }
 0x115   :  { %199 = vsyncpa [#allocation4], 1 }
 0x116   :  { %200 = vsyncpa [#allocation7], 1 }
 0x117   :  { %201 = vsyncpa [#allocation10], 1 }
 0x118   :  { %202 = vsyncpa [#allocation5], 1 }
 0x119   :  { %203 = vsyncpa [#allocation13], 1 }

</bundles_post_ra>
